<compile_context>
chip_gen: v7x
topology: tpu7x:2x2x1
jax: 0.10.0
libtpu: 0.0.40
codegen_flags: <defaults>
</compile_context>

<pallas_src>
import functools

import jax
import jax.numpy as jnp
import numpy as np
from jax.experimental import pallas as pl
from jax.experimental.pallas import tpu as pltpu

HIDDEN = 64                               # per-branch hidden; fused width = 128
_NEG_BIG = -1e30                          # finite "-inf" for masked softmax
_LOG_2PI = float(np.log(2.0 * np.pi))
_VMEM_LIMIT_BYTES = 32 * 1024 * 1024      # explicit scoped-VMEM limit (safe on v7x)
_VMEM_TILE_BUDGET = 16 * 1024 * 1024      # budget for double-buffered batch tiles
_WEIGHT_ORDER = ("w1", "b1", "w2", "b2", "w3", "b3")


# ----------------------------------------------------------------------------
# Small helpers
# ----------------------------------------------------------------------------
def _round_up(x, m):
    return ((x + m - 1) // m) * m


def _num_tensorcores():
    """Best-effort TensorCores-per-chip (2 on v7x, 1 on v5e/v6e)."""
    # TODO(synk): swap attribute probing for the official TpuInfo field once stable.
    try:
        info = pltpu.get_tpu_info()
    except Exception:
        return 1
    for attr in ("num_cores", "num_tensorcores", "tensorcore_count",
                 "core_count", "cores_per_chip", "num_cores_per_chip"):
        v = getattr(info, attr, None)
        if v is not None:
            try:
                v = int(v)
            except (TypeError, ValueError):
                continue
            if v > 0:
                return v
    return 1


def _pick_batch_tile(B, row_bytes, max_tile=4096):
    """Largest sublane-aligned batch tile fitting the VMEM tile budget."""
    cap = max(8, (_VMEM_TILE_BUDGET // max(row_bytes, 1)) // 8 * 8)
    tb = min(max_tile, cap, _round_up(B, 8))
    tb = max(8, (tb // 8) * 8)
    # Only on multi-TC chips (v7x): prefer grid >= 2 so "parallel" shards across cores.
    if _num_tensorcores() >= 2 and tb >= 16:
        b_pad = _round_up(B, 8)
        if pl.cdiv(b_pad, tb) < 2:
            tb = max(8, _round_up(pl.cdiv(b_pad, 2), 8))
    return tb


def _whole_spec(shape):
    # Grid-invariant block: resident in VMEM, not re-DMA'd per grid step.
    return pl.BlockSpec(shape, lambda i: tuple(0 for _ in shape))


def _pad_rows(x, b_pad):
    B = x.shape[0]
    if b_pad == B:
        return x
    return jnp.pad(x, ((0, b_pad - B),) + ((0, 0),) * (x.ndim - 1))


# ----------------------------------------------------------------------------
# Kernels
# ----------------------------------------------------------------------------
def _fused_trunk(x_ref, w1_ref, b1_ref, w2_ref, b2_ref, w3_ref, b3_ref):
    """Shared actor|critic trunk: three fused 128-lane matmuls, f32 accumulate.

    Returns y [tb, out_pad] f32: actor logits in lanes [0, A), critic value in
    lane A, padding lanes beyond that.
    """
    x = x_ref[...]
    h = jnp.tanh(jnp.dot(x, w1_ref[...], preferred_element_type=jnp.float32)
                 + b1_ref[...])
    h = jnp.tanh(jnp.dot(h.astype(w2_ref.dtype), w2_ref[...],
                         preferred_element_type=jnp.float32) + b2_ref[...])
    y = jnp.dot(h.astype(w3_ref.dtype), w3_ref[...],
                preferred_element_type=jnp.float32) + b3_ref[...]
    return y


def _forward_kernel(has_continuous_action_space, action_dim,
                    x_ref, w1_ref, b1_ref, w2_ref, b2_ref, w3_ref, b3_ref,
                    out_ref):
    y = _fused_trunk(x_ref, w1_ref, b1_ref, w2_ref, b2_ref, w3_ref, b3_ref)
    lane = jax.lax.broadcasted_iota(jnp.int32, y.shape, dimension=1)
    is_actor = lane < action_dim

    if has_continuous_action_space:
        out = jnp.where(is_actor, jnp.tanh(y), y)
    else:
        # Masked softmax over the actor lanes (Softmax(dim=-1) of the module).
        logits = jnp.where(is_actor, y, _NEG_BIG)
        m = jnp.max(logits, axis=-1, keepdims=True)
        e = jnp.exp(logits - m)
        denom = jnp.sum(e, axis=-1, keepdims=True)
        out = jnp.where(is_actor, e * pl.reciprocal(denom, approx=True), y)

    # Zero padding lanes (> action_dim) so no future consumer sees garbage.
    out = jnp.where(lane <= action_dim, out, 0.0)
    out_ref[...] = out.astype(out_ref.dtype)


def _evaluate_kernel(action_dim,
                     x_ref, a_ref, ivar_ref,
                     w1_ref, b1_ref, w2_ref, b2_ref, w3_ref, b3_ref,
                     out_ref):
    """Continuous-action evaluate(): diag-Gaussian log-prob / value / entropy
    fused with the MLP trunk.  Output lanes: 0 -> log-prob, 1 -> value,
    2 -> entropy, rest zero."""
    y = _fused_trunk(x_ref, w1_ref, b1_ref, w2_ref, b2_ref, w3_ref, b3_ref)
    lane = jax.lax.broadcasted_iota(jnp.int32, y.shape, dimension=1)

    # Actor mean on the narrow (lane-offset-0) actor slice only.
    mean_a = jnp.tanh(y[:, :action_dim])                          # [tb, A]
    ivar = ivar_ref[...]                                          # [1, A] f32
    diff = a_ref[...] - mean_a                                    # [tb, A]
    maha = jnp.sum(diff * diff * ivar, axis=-1, keepdims=True)    # [tb, 1]
    log_det = -jnp.sum(jnp.log(ivar), axis=-1, keepdims=True)     # [1, 1]
    logprob = -0.5 * (maha + action_dim * _LOG_2PI + log_det)     # [tb, 1]
    entropy = 0.5 * action_dim * (1.0 + _LOG_2PI) + 0.5 * log_det  # [1, 1]

    # Critic value sits in lane `action_dim` of the fused trunk output.
    value = jnp.sum(jnp.where(lane == action_dim, y, 0.0),
                    axis=-1, keepdims=True)                       # [tb, 1]

    out = (jnp.where(lane == 0, logprob, 0.0)
           + jnp.where(lane == 1, value, 0.0)
           + jnp.where(lane == 2, entropy, 0.0))
    out_ref[...] = out.astype(out_ref.dtype)


# ----------------------------------------------------------------------------
# Parameter packing
# ----------------------------------------------------------------------------
def pack_params(params, action_dim, dtype=jnp.bfloat16):
    """Fuse the 6 Linear layers into 3 full-width (128-lane) weight/bias pairs.

    Weights are cast to `dtype` (bf16 by default -> native MXU, half the HBM
    read); biases stay f32 (added to the f32 accumulator).
    """
    H = HIDDEN
    A = action_dim
    out_pad = max(128, _round_up(A + 1, 128))

    w1 = jnp.concatenate([params["wa1"], params["wc1"]], axis=1)          # [S, 2H]
    b1 = jnp.concatenate([params["ba1"], params["bc1"]], axis=1)          # [1, 2H]

    w2 = jnp.zeros((2 * H, 2 * H), jnp.float32)
    w2 = w2.at[:H, :H].set(params["wa2"]).at[H:, H:].set(params["wc2"])   # block-diag
    b2 = jnp.concatenate([params["ba2"], params["bc2"]], axis=1)          # [1, 2H]

    w3 = jnp.zeros((2 * H, out_pad), jnp.float32)
    w3 = w3.at[:H, :A].set(params["wa3"]).at[H:, A:A + 1].set(params["wc3"])
    b3 = jnp.zeros((1, out_pad), jnp.float32)
    b3 = b3.at[:, :A].set(params["ba3"]).at[:, A:A + 1].set(params["bc3"])

    return {"w1": w1.astype(dtype), "b1": b1.astype(jnp.float32),
            "w2": w2.astype(dtype), "b2": b2.astype(jnp.float32),
            "w3": w3.astype(dtype), "b3": b3.astype(jnp.float32)}


# ----------------------------------------------------------------------------
# Wrappers
# ----------------------------------------------------------------------------
def actor_critic_forward(state, fused, action_dim, *,
                         has_continuous_action_space=True,
                         max_batch_tile=4096, out_dtype=jnp.bfloat16):
    """Fused actor+critic forward.

    state : [B, state_dim]
    fused : output of pack_params()
    returns (actor_out [B, action_dim] f32, state_values [B, 1] f32)
    """
    B, S = state.shape
    out_pad = fused["w3"].shape[1]
    in_dt = fused["w1"].dtype
    row_bytes = (2 * S * jnp.dtype(in_dt).itemsize
                 + 2 * out_pad * jnp.dtype(out_dtype).itemsize)
    tb = _pick_batch_tile(B, row_bytes, max_batch_tile)
    b_pad = _round_up(B, tb)
    x = _pad_rows(state.astype(in_dt), b_pad)

    kernel = functools.partial(_forward_kernel,
                               has_continuous_action_space, action_dim)

    in_specs = [pl.BlockSpec((tb, S), lambda i: (i, 0))]
    in_specs += [_whole_spec(fused[n].shape) for n in _WEIGHT_ORDER]

    fn = pl.pallas_call(
        kernel,
        out_shape=jax.ShapeDtypeStruct((b_pad, out_pad), out_dtype),
        grid_spec=pltpu.PrefetchScalarGridSpec(
            num_scalar_prefetch=0,
            grid=(b_pad // tb,),
            in_specs=in_specs,
            out_specs=pl.BlockSpec((tb, out_pad), lambda i: (i, 0)),
        ),
        compiler_params=pltpu.CompilerParams(
            dimension_semantics=("parallel",),
            vmem_limit_bytes=_VMEM_LIMIT_BYTES),
    )
    packed = fn(x, *[fused[n] for n in _WEIGHT_ORDER])

    actor_out = packed[:B, :action_dim].astype(jnp.float32)
    state_values = packed[:B, action_dim:action_dim + 1].astype(jnp.float32)
    return actor_out, state_values


def evaluate_continuous(state, action, fused, action_dim, action_var, *,
                        max_batch_tile=4096, out_dtype=jnp.float32):
    """ActorCritic.evaluate() for the continuous-action case, fully fused:
    MLP trunk + diagonal-Gaussian log-prob / entropy + value in one kernel."""
    B, S = state.shape
    out_pad = fused["w3"].shape[1]
    in_dt = fused["w1"].dtype
    row_bytes = (2 * S * jnp.dtype(in_dt).itemsize
                 + 2 * action_dim * 4
                 + 2 * out_pad * jnp.dtype(out_dtype).itemsize)
    tb = _pick_batch_tile(B, row_bytes, max_batch_tile)
    b_pad = _round_up(B, tb)

    x = _pad_rows(state.astype(in_dt), b_pad)
    a = _pad_rows(action.reshape(-1, action_dim).astype(jnp.float32), b_pad)
    inv_var = (1.0 / action_var).reshape(1, action_dim).astype(jnp.float32)

    kernel = functools.partial(_evaluate_kernel, action_dim)

    in_specs = [pl.BlockSpec((tb, S), lambda i: (i, 0)),
                pl.BlockSpec((tb, action_dim), lambda i: (i, 0)),
                _whole_spec((1, action_dim))]
    in_specs += [_whole_spec(fused[n].shape) for n in _WEIGHT_ORDER]

    fn = pl.pallas_call(
        kernel,
        out_shape=jax.ShapeDtypeStruct((b_pad, out_pad), out_dtype),
        grid_spec=pltpu.PrefetchScalarGridSpec(
            num_scalar_prefetch=0,
            grid=(b_pad // tb,),
            in_specs=in_specs,
            out_specs=pl.BlockSpec((tb, out_pad), lambda i: (i, 0)),
        ),
        compiler_params=pltpu.CompilerParams(
            dimension_semantics=("parallel",),
            vmem_limit_bytes=_VMEM_LIMIT_BYTES),
    )
    packed = fn(x, a, inv_var, *[fused[n] for n in _WEIGHT_ORDER])

    action_logprobs = packed[:B, 0].astype(jnp.float32)
    state_values = packed[:B, 1:2].astype(jnp.float32)
    dist_entropy = packed[:B, 2].astype(jnp.float32)
    return action_logprobs, state_values, dist_entropy


# ----------------------------------------------------------------------------
# Init + pure-JAX references
# ----------------------------------------------------------------------------
def init_linear(key, fan_in, fan_out):
    # Matches torch.nn.Linear default init: U(-1/sqrt(fan_in), 1/sqrt(fan_in)).
    kw, kb = jax.random.split(key)
    bound = 1.0 / np.sqrt(fan_in)
    w = jax.random.uniform(kw, (fan_in, fan_out), jnp.float32, -bound, bound)
    b = jax.random.uniform(kb, (1, fan_out), jnp.float32, -bound, bound)
    return w, b


def init_params(key, state_dim, action_dim):
    keys = jax.random.split(key, 6)
    p = {}
    p["wa1"], p["ba1"] = init_linear(keys[0], state_dim, HIDDEN)
    p["wa2"], p["ba2"] = init_linear(keys[1], HIDDEN, HIDDEN)
    p["wa3"], p["ba3"] = init_linear(keys[2], HIDDEN, action_dim)
    p["wc1"], p["bc1"] = init_linear(keys[3], state_dim, HIDDEN)
    p["wc2"], p["bc2"] = init_linear(keys[4], HIDDEN, HIDDEN)
    p["wc3"], p["bc3"] = init_linear(keys[5], HIDDEN, 1)
    return p


def reference_forward(state, params, has_continuous_action_space=True):
    h = jnp.tanh(state @ params["wa1"] + params["ba1"])
    h = jnp.tanh(h @ params["wa2"] + params["ba2"])
    logits = h @ params["wa3"] + params["ba3"]
    if has_continuous_action_space:
        actor = jnp.tanh(logits)
    else:
        actor = jax.nn.softmax(logits, axis=-1)
    c = jnp.tanh(state @ params["wc1"] + params["bc1"])
    c = jnp.tanh(c @ params["wc2"] + params["bc2"])
    v = c @ params["wc3"] + params["bc3"]
    return actor, v


def reference_evaluate(state, action, params, action_var):
    mean, value = reference_forward(state, params, True)
    A = mean.shape[-1]
    log_det = jnp.sum(jnp.log(action_var))
    log2pi = jnp.log(2.0 * jnp.pi)
    diff = action - mean
    maha = jnp.sum(diff * diff / action_var, axis=-1)
    logp = -0.5 * (maha + A * log2pi + log_det)
    ent = jnp.full((mean.shape[0],), 0.5 * A * (1.0 + log2pi) + 0.5 * log_det,
                   jnp.float32)
    return logp, value, ent


# ----------------------------------------------------------------------------
# Demo / correctness checks
# ----------------------------------------------------------------------------
if __name__ == "__main__":
    B, STATE_DIM, ACTION_DIM = 8, 16, 4
    ACTION_STD_INIT = 0.6

    key = jax.random.PRNGKey(0)
    k_params, k_state, k_action = jax.random.split(key, 3)

    params = init_params(k_params, STATE_DIM, ACTION_DIM)
    state = jax.random.normal(k_state, (B, STATE_DIM), jnp.float32)
    action = jax.random.normal(k_action, (B, ACTION_DIM), jnp.float32)
    action_var = jnp.full((ACTION_DIM,), ACTION_STD_INIT * ACTION_STD_INIT,
                          jnp.float32)

    ref_mean, ref_val = reference_forward(state, params, True)
    ref_probs, _ = reference_forward(state, params, False)
    ref_logp, ref_vals, ref_ent = reference_evaluate(state, action, params,
                                                     action_var)

    # ---- f32 precision path: exact check (same trunk, no bf16) ------------
    fused32 = pack_params(params, ACTION_DIM, dtype=jnp.float32)
    mean32, val32 = actor_critic_forward(state, fused32, ACTION_DIM,
                                         has_continuous_action_space=True,
                                         out_dtype=jnp.float32)
    jax.block_until_ready((mean32, val32))
    np.testing.assert_allclose(np.asarray(mean32), np.asarray(ref_mean),
                               rtol=1e-5, atol=1e-5)
    np.testing.assert_allclose(np.asarray(val32), np.asarray(ref_val),
                               rtol=1e-5, atol=1e-5)

    # ---- bf16 fast path (default): relaxed checks --------------------------
    fused = pack_params(params, ACTION_DIM)            # bf16 weights, f32 biases

    mean_bf, val_bf = actor_critic_forward(state, fused, ACTION_DIM,
                                           has_continuous_action_space=True)
    probs_bf, _ = actor_critic_forward(state, fused, ACTION_DIM,
                                       has_continuous_action_space=False)
    logp, vals, ent = evaluate_continuous(state, action, fused, ACTION_DIM,
                                          action_var)
    jax.block_until_ready((mean_bf, val_bf, probs_bf, logp, vals, ent))

    np.testing.assert_allclose(np.asarray(mean_bf), np.asarray(ref_mean),
                               rtol=4e-2, atol=4e-2)
    np.testing.assert_allclose(np.asarray(val_bf), np.asarray(ref_val),
                               rtol=4e-2, atol=4e-2)
    np.testing.assert_allclose(np.asarray(probs_bf), np.asarray(ref_probs),
                               rtol=4e-2, atol=4e-2)
    np.testing.assert_allclose(np.asarray(logp), np.asarray(ref_logp),
                               rtol=5e-2, atol=1e-1)
    np.testing.assert_allclose(np.asarray(vals), np.asarray(ref_vals),
                               rtol=4e-2, atol=4e-2)
    np.testing.assert_allclose(np.asarray(ent), np.asarray(ref_ent),
                               rtol=1e-3, atol=1e-3)

    print("KERNEL_OK")
</pallas_src>

<mosaic_0001>
module attributes {stable_mosaic.version = 11 : i64} {
  func.func @_forward_kernel(%arg0: i32, %arg1: memref<8x16xf32, #tpu.memory_space<vmem>>, %arg2: memref<16x128xf32, #tpu.memory_space<vmem>>, %arg3: memref<1x128xf32, #tpu.memory_space<vmem>>, %arg4: memref<128x128xf32, #tpu.memory_space<vmem>>, %arg5: memref<1x128xf32, #tpu.memory_space<vmem>>, %arg6: memref<128x128xf32, #tpu.memory_space<vmem>>, %arg7: memref<1x128xf32, #tpu.memory_space<vmem>>, %arg8: memref<8x128xf32, #tpu.memory_space<vmem>>) attributes {dimension_semantics = [#tpu.dimension_semantics<parallel>], iteration_bounds = array<i64: 1>, scalar_prefetch = 0 : i64, scratch_operands = 0 : i64, tpu.core_type = #tpu.core_type<tc>, window_params = [{transform_indices = @transform_0, window_bounds = array<i64: 8, 16>}, {pipeline_mode = #tpu.pipeline_mode<synchronous>, transform_indices = @transform_1, window_bounds = array<i64: 16, 128>}, {pipeline_mode = #tpu.pipeline_mode<synchronous>, transform_indices = @transform_2, window_bounds = array<i64: 1, 128>}, {pipeline_mode = #tpu.pipeline_mode<synchronous>, transform_indices = @transform_3, window_bounds = array<i64: 128, 128>}, {pipeline_mode = #tpu.pipeline_mode<synchronous>, transform_indices = @transform_4, window_bounds = array<i64: 1, 128>}, {pipeline_mode = #tpu.pipeline_mode<synchronous>, transform_indices = @transform_5, window_bounds = array<i64: 128, 128>}, {pipeline_mode = #tpu.pipeline_mode<synchronous>, transform_indices = @transform_6, window_bounds = array<i64: 1, 128>}, {transform_indices = @transform_7, window_bounds = array<i64: 8, 128>}]} {
    %c0 = arith.constant 0 : index
    %c0_0 = arith.constant 0 : index
    %0 = vector.load %arg1[%c0, %c0_0] : memref<8x16xf32, #tpu.memory_space<vmem>>, vector<8x16xf32>
    %c0_1 = arith.constant 0 : index
    %c0_2 = arith.constant 0 : index
    %1 = vector.load %arg2[%c0_1, %c0_2] : memref<16x128xf32, #tpu.memory_space<vmem>>, vector<16x128xf32>
    %cst = arith.constant dense<0.000000e+00> : vector<8x128xf32>
    %2 = tpu.matmul %0, %1, %cst {dimension_numbers = #tpu.dot_dimension_numbers<[1], [0], [0], [1], [0, 0, 1, 1], [], []>} : vector<8x16xf32>, vector<16x128xf32>, vector<8x128xf32> -> vector<8x128xf32>
    %c0_3 = arith.constant 0 : index
    %c0_4 = arith.constant 0 : index
    %3 = vector.load %arg3[%c0_3, %c0_4] : memref<1x128xf32, #tpu.memory_space<vmem>>, vector<1x128xf32>
    %4 = vector.broadcast %3 : vector<1x128xf32> to vector<8x128xf32>
    %5 = arith.addf %2, %4 : vector<8x128xf32>
    %6 = math.tanh %5 : vector<8x128xf32>
    %c0_5 = arith.constant 0 : index
    %c0_6 = arith.constant 0 : index
    %7 = vector.load %arg4[%c0_5, %c0_6] : memref<128x128xf32, #tpu.memory_space<vmem>>, vector<128x128xf32>
    %cst_7 = arith.constant dense<0.000000e+00> : vector<8x128xf32>
    %8 = tpu.matmul %6, %7, %cst_7 {dimension_numbers = #tpu.dot_dimension_numbers<[1], [0], [0], [1], [0, 0, 1, 1], [], []>} : vector<8x128xf32>, vector<128x128xf32>, vector<8x128xf32> -> vector<8x128xf32>
    %c0_8 = arith.constant 0 : index
    %c0_9 = arith.constant 0 : index
    %9 = vector.load %arg5[%c0_8, %c0_9] : memref<1x128xf32, #tpu.memory_space<vmem>>, vector<1x128xf32>
    %10 = vector.broadcast %9 : vector<1x128xf32> to vector<8x128xf32>
    %11 = arith.addf %8, %10 : vector<8x128xf32>
    %12 = math.tanh %11 : vector<8x128xf32>
    %c0_10 = arith.constant 0 : index
    %c0_11 = arith.constant 0 : index
    %13 = vector.load %arg6[%c0_10, %c0_11] : memref<128x128xf32, #tpu.memory_space<vmem>>, vector<128x128xf32>
    %cst_12 = arith.constant dense<0.000000e+00> : vector<8x128xf32>
    %14 = tpu.matmul %12, %13, %cst_12 {dimension_numbers = #tpu.dot_dimension_numbers<[1], [0], [0], [1], [0, 0, 1, 1], [], []>} : vector<8x128xf32>, vector<128x128xf32>, vector<8x128xf32> -> vector<8x128xf32>
    %c0_13 = arith.constant 0 : index
    %c0_14 = arith.constant 0 : index
    %15 = vector.load %arg7[%c0_13, %c0_14] : memref<1x128xf32, #tpu.memory_space<vmem>>, vector<1x128xf32>
    %16 = vector.broadcast %15 : vector<1x128xf32> to vector<8x128xf32>
    %17 = arith.addf %14, %16 : vector<8x128xf32>
    %18 = tpu.iota {dimensions = array<i32: 1>} : vector<8x128xi32>
    %c4_i32 = arith.constant 4 : i32
    %19 = vector.broadcast %c4_i32 : i32 to vector<8x128xi32>
    %20 = arith.cmpi slt, %18, %19 : vector<8x128xi32>
    %21 = math.tanh %17 : vector<8x128xf32>
    %22 = arith.select %20, %21, %17 : vector<8x128xi1>, vector<8x128xf32>
    %c4_i32_15 = arith.constant 4 : i32
    %23 = vector.broadcast %c4_i32_15 : i32 to vector<8x128xi32>
    %24 = arith.cmpi sle, %18, %23 : vector<8x128xi32>
    %cst_16 = arith.constant 0.000000e+00 : f32
    %25 = vector.broadcast %cst_16 : f32 to vector<8x128xf32>
    %26 = arith.select %24, %22, %25 : vector<8x128xi1>, vector<8x128xf32>
    %c0_17 = arith.constant 0 : index
    %c0_18 = arith.constant 0 : index
    %27 = vector.load %arg8[%c0_17, %c0_18] : memref<8x128xf32, #tpu.memory_space<vmem>>, vector<8x128xf32>
    tpu.vector_store %arg8[%c0_17, %c0_18], %26 {strides = array<i32>} : memref<8x128xf32, #tpu.memory_space<vmem>>, vector<8x128xf32>,
    return
  }
  func.func @transform_0(%arg0: i32) -> (i32, i32) {
    %c0_i32 = arith.constant 0 : i32
    %c0_i32_0 = arith.constant 0 : i32
    return %arg0, %c0_i32 : i32, i32
  }
  func.func @transform_1(%arg0: i32) -> (i32, i32) {
    %c0_i32 = arith.constant 0 : i32
    %c0_i32_0 = arith.constant 0 : i32
    %c0_i32_1 = arith.constant 0 : i32
    return %c0_i32, %c0_i32_0 : i32, i32
  }
  func.func @transform_2(%arg0: i32) -> (i32, i32) {
    %c0_i32 = arith.constant 0 : i32
    %c0_i32_0 = arith.constant 0 : i32
    %c0_i32_1 = arith.constant 0 : i32
    return %c0_i32, %c0_i32_0 : i32, i32
  }
  func.func @transform_3(%arg0: i32) -> (i32, i32) {
    %c0_i32 = arith.constant 0 : i32
    %c0_i32_0 = arith.constant 0 : i32
    %c0_i32_1 = arith.constant 0 : i32
    return %c0_i32, %c0_i32_0 : i32, i32
  }
  func.func @transform_4(%arg0: i32) -> (i32, i32) {
    %c0_i32 = arith.constant 0 : i32
    %c0_i32_0 = arith.constant 0 : i32
    %c0_i32_1 = arith.constant 0 : i32
    return %c0_i32, %c0_i32_0 : i32, i32
  }
  func.func @transform_5(%arg0: i32) -> (i32, i32) {
    %c0_i32 = arith.constant 0 : i32
    %c0_i32_0 = arith.constant 0 : i32
    %c0_i32_1 = arith.constant 0 : i32
    return %c0_i32, %c0_i32_0 : i32, i32
  }
  func.func @transform_6(%arg0: i32) -> (i32, i32) {
    %c0_i32 = arith.constant 0 : i32
    %c0_i32_0 = arith.constant 0 : i32
    %c0_i32_1 = arith.constant 0 : i32
    return %c0_i32, %c0_i32_0 : i32, i32
  }
  func.func @transform_7(%arg0: i32) -> (i32, i32) {
    %c0_i32 = arith.constant 0 : i32
    %c0_i32_0 = arith.constant 0 : i32
    return %arg0, %c0_i32 : i32, i32
  }
}

</mosaic_0001>

<bundles_post_ra>
// kernel: tpu_custom_call.1
= control target key start
LH: loop header
LB: loop body
LE: loop exit
PB: predicated region body
PF: predicated region fallthrough
CT: control target
= control target key end

     0   :  { %12 = vsyncpa [#allocation3], 0  ;;  %s828_s0 = inlined_call_operand.hbm [shape: f32[8,16], index: 0, kind: input, shape index: {}]   ;;  %s829_s1 = inlined_call_operand.hbm [shape: f32[16,128], index: 1, kind: input, shape index: {}]   ;;  %s830_s2 = inlined_call_operand.vmem [shape: f32[1,128], index: 2, kind: input, shape index: {}]   ;;  %s831_s3 = inlined_call_operand.hbm [shape: f32[128,128], index: 3, kind: input, shape index: {}]   ;;  %s832_s4 = inlined_call_operand.vmem [shape: f32[1,128], index: 4, kind: input, shape index: {}]   ;;  %s833_s5 = inlined_call_operand.hbm [shape: f32[128,128], index: 5, kind: input, shape index: {}]   ;;  %s834_s6 = inlined_call_operand.vmem [shape: f32[1,128], index: 6, kind: input, shape index: {}]   ;;  %s835_s7 = inlined_call_operand.hbm [shape: f32[8,128], index: 7, kind: output, shape index: {}]  }
   0x1   :  { %13 = vsyncpa [#allocation6], 0 }
   0x2   :  { %14 = vsyncpa [#allocation9], 0 }
   0x3   :  { %15 = vsyncpa [#allocation4], 0  ;;  %s680_s24 = smov [#allocation5]   ;;  %s562_s28 = scalar_lea.hbm %s829_s1, 256 }
   0x4   :  { %s31_s25 = sshll.u32 %s680_s24, 4  ;;  %p563_p0 = scmp.ne.s32.totalorder %s829_s1, %s562_s28  ;;  %s32_s25 = int_to_ptr.vmem [resolvable:$true] %s31_s25 }
   0x5   :  { %p566_p1 = scmp.lt.u32.totalorder %s562_s28, %s829_s1 }
   0x7   :  { %p568_p2 = pnand %p566_p1, %p563_p0 }
   0x9   :  { %571 = shalt.err (!%p568_p2)
}
   0xa   :  { %s572_s10 = scalar_lea.vmem %s32_s25, 256  ;;  %p577_p4 = scmp.lt.s32.totalorder %s32_s25, %s32_s25 }
   0xb   :  { %p573_p3 = scmp.ne.s32.totalorder %s32_s25, %s572_s10  ;;  %p578_p5 = scmp.lt.s32.totalorder %s572_s10, %s572_s10 }
   0xd   :  { %p579_p6 = por %p578_p5, %p577_p4 }
   0xf   :  { %p580_p7 = pnand %p579_p6, %p573_p3 }
  0x11   :  { %583 = shalt.err (!%p580_p7)
}
  0x12   :  { %s681_s11 = smov 128   ;;  %s682_s12 = smov 8  }
  0x13   :  { %37 = dma.hbm_to_vmem [thread:$0]  %s829_s1, 256, %s32_s25, [#allocation6], %s681_s11, %s681_s11, %s682_s12  }
  0x14   :  { %s683_s15 = smov [#allocation2]   ;;  %s684_s17 = smov [#allocation7]  }
  0x15   :  { %s22_s16 = sshll.u32 %s683_s15, 4  ;;  %s45_s18 = sshll.u32 %s684_s17, 4  ;;  %s23_s16 = int_to_ptr.vmem [resolvable:$true] %s22_s16  ;;  %s46_s18 = int_to_ptr.vmem [resolvable:$true] %s45_s18 }
  0x16   :  { %s584_s21 = scalar_lea.hbm %s828_s0, 128 }
  0x17   :  { %p585_p8 = scmp.ne.s32.totalorder %s828_s0, %s584_s21  ;;  %p588_p9 = scmp.lt.u32.totalorder %s584_s21, %s828_s0 }
  0x19   :  { %p590_p10 = pnand %p588_p9, %p585_p8 }
  0x1b   :  { %593 = shalt.err (!%p590_p10)
}
  0x1c   :  { %s594_s1 = scalar_lea.vmem %s23_s16, 128  ;;  %p599_p12 = scmp.lt.s32.totalorder %s23_s16, %s23_s16 }
  0x1d   :  { %p595_p11 = scmp.ne.s32.totalorder %s23_s16, %s594_s1  ;;  %p600_p13 = scmp.lt.s32.totalorder %s594_s1, %s594_s1 }
  0x1f   :  { %p601_p0 = por %p600_p13, %p599_p12 }
  0x21   :  { %p602_p1 = pnand %p601_p0, %p595_p11 }
  0x23   :  { %605 = shalt.err (!%p602_p1)
}
  0x24   :  { %25 = dma.hbm_to_vmem [thread:$0]  %s828_s0, 128, %s23_s16, [#allocation3]  }
  0x25   :  { %s606_s30 = scalar_lea.hbm %s831_s3, 2048 }
  0x26   :  { %p607_p2 = scmp.ne.s32.totalorder %s831_s3, %s606_s30  ;;  %p610_p3 = scmp.lt.u32.totalorder %s606_s30, %s831_s3 }
  0x28   :  { %p612_p4 = pnand %p610_p3, %p607_p2 }
  0x2a   :  { %615 = shalt.err (!%p612_p4)
}
  0x2b   :  { %s616_s14 = scalar_lea.vmem %s46_s18, 2048  ;;  %p621_p6 = scmp.lt.s32.totalorder %s46_s18, %s46_s18 }
  0x2c   :  { %p617_p5 = scmp.ne.s32.totalorder %s46_s18, %s616_s14  ;;  %p622_p7 = scmp.lt.s32.totalorder %s616_s14, %s616_s14 }
  0x2e   :  { %p623_p8 = por %p622_p7, %p621_p6 }
  0x30   :  { %p624_p9 = pnand %p623_p8, %p617_p5 }
  0x32   :  { %627 = shalt.err (!%p624_p9)
}
  0x33   :  { %51 = dma.hbm_to_vmem [thread:$0]  %s831_s3, 2048, %s46_s18, [#allocation6], %s681_s11, %s681_s11, %s682_s12  }
  0x34   :  { %s685_s16 = smov [#allocation8]   ;;  %s628_s21 = scalar_lea.hbm %s833_s5, 2048 }
  0x35   :  { %s59_s17 = sshll.u32 %s685_s16, 4  ;;  %p629_p10 = scmp.ne.s32.totalorder %s833_s5, %s628_s21  ;;  %s60_s17 = int_to_ptr.vmem [resolvable:$true] %s59_s17 }
  0x36   :  { %p632_p11 = scmp.lt.u32.totalorder %s628_s21, %s833_s5 }
  0x38   :  { %p634_p12 = pnand %p632_p11, %p629_p10 }
  0x3a   :  { %637 = shalt.err (!%p634_p12)
}
  0x3b   :  { %s638_s1 = scalar_lea.vmem %s60_s17, 2048  ;;  %p643_p0 = scmp.lt.s32.totalorder %s60_s17, %s60_s17 }
  0x3c   :  { %p639_p13 = scmp.ne.s32.totalorder %s60_s17, %s638_s1  ;;  %p644_p1 = scmp.lt.s32.totalorder %s638_s1, %s638_s1 }
  0x3e   :  { %p645_p2 = por %p644_p1, %p643_p0 }
  0x40   :  { %p646_p3 = pnand %p645_p2, %p639_p13 }
  0x42   :  { %649 = shalt.err (!%p646_p3)
}
  0x43   :  { %65 = dma.hbm_to_vmem [thread:$0]  %s833_s5, 2048, %s60_s17, [#allocation9], %s681_s11, %s681_s11, %s682_s12  }
  0x44   :  { %672 = dma.done.wait [#allocation3], 128  }
  0x45   :  { %673 = vsyncadd [#allocation3], 4294967168 }
  0x46   :  { %674 = dma.done.wait [#allocation6], 2304  }
  0x47   :  { %675 = vsyncadd [#allocation6], 4294964992 }
  0x48   :  { %676 = dma.done.wait [#allocation9], 2048  }
  0x49   :  { %677 = vsyncadd [#allocation9], 4294965248  ;;  %v686_v0 = vmov 0.0|0.0   ;;  %vm687_vm0 = vmmov 0   ;;  %v688_v1 = vmov 0.0   ;;  %v81_v2 = vld [vmem:[#allocation5] sm:$0xff] }
  0x4a   :  { %495 = vmatprep.subr.bf16.mxu0 %v686_v0  ;;  %422 = vmatprep.mubr.msk.f32.mxu0 %vm687_vm0, %v688_v1  ;;  %v82_v3 = vld [vmem:[#allocation5 + $0x8] sm:$0xff]  ;;  %v165_v5 = vld [vmem:[#allocation7] sm:$0xff]  ;;  %v166_v6 = vld [vmem:[#allocation7 + $0x8] sm:$0xff]  ;;  %vm90_vm1 = vcmask 130048   ;;  %s689_s28 = smov [#allocation10]  }
  0x4b   :  { %498 = vmatprep.subr.bf16.mxu1 %v686_v0  ;;  %457 = vmatprep.mubr.msk.f32.mxu1 %vm687_vm0, %v688_v1  ;;  %v496_v4 = vpack.c.bf16 %v82_v3, %v81_v2  ;;  %v167_v7 = vld [vmem:[#allocation7 + $0x10] sm:$0xff]  ;;  %v499_v8 = vpack.c.bf16 %v166_v6, %v165_v5  ;;  %v168_v9 = vld [vmem:[#allocation7 + $0x18] sm:$0xff]  ;;  %v80_v10 = vld [vmem:[#allocation2] sm:$0xff]  ;;  %s366_s29 = sshll.u32 %s689_s28, 4  ;;  %s367_s29 = int_to_ptr.vmem [resolvable:$true] %s366_s29 }
  0x4c   :  { %v502_v11 = vpack.c.bf16 %v168_v9, %v167_v7  ;;  %v169_v12 = vld [vmem:[#allocation7 + $0x20] sm:$0xff]  ;;  %v170_v13 = vld [vmem:[#allocation7 + $0x28] sm:$0xff]  ;;  %v171_v15 = vld [vmem:[#allocation7 + $0x30] sm:$0xff]  ;;  %p655_p5 = scmp.lt.s32.totalorder %s367_s29, %s367_s29 }
  0x4d   :  { %497 = vmatpush3.bf16.msra.mxu0 %v496_v4  ;;  %500 = vmatpush3.bf16.msra.mxu1 %v499_v8  ;;  %v505_v14 = vpack.c.bf16 %v170_v13, %v169_v12  ;;  %v172_v16 = vld [vmem:[#allocation7 + $0x38] sm:$0xff]  ;;  %v173_v18 = vld [vmem:[#allocation7 + $0x40] sm:$0xff]  ;;  %v174_v19 = vld [vmem:[#allocation7 + $0x48] sm:$0xff] }
  0x4e   :  { %522 = vmatprep.subr.bf16.mxu0 %v686_v0  ;;  %501 = vmatprep.subr.bf16.mxu1 %v686_v0  ;;  %v508_v17 = vpack.c.bf16 %v172_v16, %v171_v15  ;;  %v511_v20 = vpack.c.bf16 %v174_v19, %v173_v18  ;;  %v175_v21 = vld [vmem:[#allocation7 + $0x50] sm:$0xff]  ;;  %v176_v22 = vld [vmem:[#allocation7 + $0x58] sm:$0xff]  ;;  %v177_v24 = vld [vmem:[#allocation7 + $0x60] sm:$0xff] }
  0x4f   :  { %v514_v23 = vpack.c.bf16 %v176_v22, %v175_v21  ;;  %v178_v25 = vld [vmem:[#allocation7 + $0x68] sm:$0xff]  ;;  %v179_v27 = vld [vmem:[#allocation7 + $0x70] sm:$0xff]  ;;  %v180_v28 = vld [vmem:[#allocation7 + $0x78] sm:$0xff] }
  0x50   :  { %423 = vmatmul.mubr.msk.f32.vlgmr.msra.gmra.mrb[0].mxu0 %vm90_vm1, %v80_v10  ;;  %v517_v26 = vpack.c.bf16 %v178_v25, %v177_v24  ;;  %v520_v29 = vpack.c.bf16 %v180_v28, %v179_v27  ;;  %v259_v30 = vld [vmem:[#allocation8] sm:$0xff]  ;;  %v260_v31 = vld [vmem:[#allocation8 + $0x8] sm:$0xff]  ;;  %v261_v32 = vld [vmem:[#allocation8 + $0x10] sm:$0xff] }
  0x51   :  { %492 = vmatprep.mubr.msk.f32.mxu0 %vm687_vm0, %v688_v1  ;;  %503 = vmatpush3.bf16.msra.mxu1 %v502_v11  ;;  %v523_v33 = vpack.c.bf16 %v260_v31, %v259_v30  ;;  %v262_v34 = vld [vmem:[#allocation8 + $0x18] sm:$0xff]  ;;  %v263_v36 = vld [vmem:[#allocation8 + $0x20] sm:$0xff]  ;;  %v264_v37 = vld [vmem:[#allocation8 + $0x28] sm:$0xff] }
  0x52   :  { %504 = vmatprep.subr.bf16.mxu1 %v686_v0  ;;  %v526_v35 = vpack.c.bf16 %v262_v34, %v261_v32  ;;  %v529_v38 = vpack.c.bf16 %v264_v37, %v263_v36  ;;  %v265_v39 = vld [vmem:[#allocation8 + $0x30] sm:$0xff]  ;;  %v266_v40 = vld [vmem:[#allocation8 + $0x38] sm:$0xff]  ;;  %v267_v42 = vld [vmem:[#allocation8 + $0x40] sm:$0xff] }
  0x53   :  { %524 = vmatpush3.bf16.msra.mxu0 %v523_v33  ;;  %v532_v41 = vpack.c.bf16 %v266_v40, %v265_v39  ;;  %v268_v43 = vld [vmem:[#allocation8 + $0x48] sm:$0xff]  ;;  %v269_v50 = vld [vmem:[#allocation8 + $0x50] sm:$0xff]  ;;  %v270_v51 = vld [vmem:[#allocation8 + $0x58] sm:$0xff] }
  0x54   :  { %525 = vmatprep.subr.bf16.mxu0 %v686_v0  ;;  %v535_v44 = vpack.c.bf16 %v268_v43, %v267_v42  ;;  %v377_v45 = vld [vmem:[%s830_s2] ss:$0 sm:$0xff]  ;;  %v538_v52 = vpack.c.bf16 %v270_v51, %v269_v50  ;;  %v271_v53 = vld [vmem:[#allocation8 + $0x60] sm:$0xff]  ;;  %v273_v56 = vld [vmem:[#allocation8 + $0x70] sm:$0xff] }
  0x55   :  { %506 = vmatpush3.bf16.msra.mxu1 %v505_v14  ;;  %v272_v54 = vld [vmem:[#allocation8 + $0x68] sm:$0xff]  ;;  %v274_v57 = vld [vmem:[#allocation8 + $0x78] sm:$0xff] }
  0x56   :  { %507 = vmatprep.subr.bf16.mxu1 %v686_v0  ;;  %v541_v55 = vpack.c.bf16 %v272_v54, %v271_v53  ;;  %v544_v58 = vpack.c.bf16 %v274_v57, %v273_v56  ;;  %v379_v59 = vld [vmem:[%s832_s4] ss:$0 sm:$0xff]  ;;  %s650_s4 = scalar_lea.vmem %s367_s29, 128 }
  0x57   :  { %527 = vmatpush3.bf16.msra.mxu0 %v526_v35  ;;  %v380_v1 = vld [vmem:[%s834_s6] ss:$0 sm:$0xff]  ;;  %p651_p4 = scmp.ne.s32.totalorder %s367_s29, %s650_s4  ;;  %p656_p6 = scmp.lt.s32.totalorder %s650_s4, %s650_s4 }
  0x58   :  { %528 = vmatprep.subr.bf16.mxu0 %v686_v0 }
  0x59   :  { %509 = vmatpush3.bf16.msra.mxu1 %v508_v17  ;;  %p657_p7 = por %p656_p6, %p655_p5 }
  0x5a   :  { %510 = vmatprep.subr.bf16.mxu1 %v686_v0 }
  0x5b   :  { %530 = vmatpush3.bf16.msra.mxu0 %v529_v38  ;;  %p658_p8 = pnand %p657_p7, %p651_p4 }
  0x5c   :  { %531 = vmatprep.subr.bf16.mxu0 %v686_v0 }
  0x5d   :  { %512 = vmatpush3.bf16.msra.mxu1 %v511_v20 }
  0x5e   :  { %513 = vmatprep.subr.bf16.mxu1 %v686_v0 }
  0x5f   :  { %533 = vmatpush3.bf16.msra.mxu0 %v532_v41 }
  0x60   :  { %534 = vmatprep.subr.bf16.mxu0 %v686_v0 }
  0x61   :  { %515 = vmatpush3.bf16.msra.mxu1 %v514_v23 }
  0x62   :  { %516 = vmatprep.subr.bf16.mxu1 %v686_v0 }
  0x63   :  { %536 = vmatpush3.bf16.msra.mxu0 %v535_v44 }
  0x64   :  { %537 = vmatprep.subr.bf16.mxu0 %v686_v0 }
  0x65   :  { %518 = vmatpush3.bf16.msra.mxu1 %v517_v26 }
  0x66   :  { %519 = vmatprep.subr.bf16.mxu1 %v686_v0 }
  0x67   :  { %539 = vmatpush3.bf16.msra.mxu0 %v538_v52 }
  0x68   :  { %540 = vmatprep.subr.bf16.mxu0 %v686_v0 }
  0x69   :  { %521 = vmatpush3.bf16.msra.mxu1 %v520_v29 }
  0x6b   :  { %542 = vmatpush3.bf16.msra.mxu0 %v541_v55 }
  0x6c   :  { %543 = vmatprep.subr.bf16.mxu0 %v686_v0  ;;  %v352_v0 = vlaneseq }
  0x6e   :  { %v353_v5 = vand.u32 127, %v352_v0 }
  0x6f   :  { %545 = vmatpush3.bf16.msra.mxu0 %v544_v58 }
  0x70   :  { %vm354_vm2 = vcmp.lt.s32.totalorder %v353_v5, 4  ;;  %vm357_vm3 = vcmp.le.s32.totalorder %v353_v5, 4 }
 0x123   :  { %v160_v46 = vpop.f32.mrb[0].mxu0 }
 0x124   :  { %v161_v47 = vadd.f32 %v377_v45, %v160_v46  ;;  %v424_v48 = vpop.f32.mrb[1].mxu0 }
 0x126   :  { %556 = vtanh.f32 %v161_v47 }
 0x130   :  { %v557_v49 = vpop.eup %556 }
 0x131   :  { %458 = vmatmul.mubr.f32.vlgmr.msra.gmra.mrb[0].mxu1 %v557_v49 }
 0x204   :  { %v254_v60 = vpop.f32.mrb[0].mxu1 }
 0x205   :  { %v255_v61 = vadd.f32 %v379_v59, %v254_v60  ;;  %v459_v62 = vpop.f32.mrb[1].mxu1 }
 0x207   :  { %558 = vtanh.f32 %v255_v61 }
 0x211   :  { %v559_v63 = vpop.eup %558 }
 0x212   :  { %493 = vmatmul.mubr.f32.vlgmr.msra.gmra.mrb[2].mxu0 %v559_v63 }
 0x2e5   :  { %v348_v2 = vpop.f32.mrb[2].mxu0 }
 0x2e6   :  { %v349_v3 = vadd.f32 %v380_v1, %v348_v2  ;;  %v494_v4 = vpop.f32.mrb[3].mxu0 }
 0x2e8   :  { %560 = vtanh.f32 %v349_v3 }
 0x2f2   :  { %v561_v6 = vpop.eup %560 }
 0x2f3   :  { %v356_v7 = vsel %vm354_vm2, %v561_v6, %v349_v3 }
 0x2f4   :  { %v358_v8 = vsel %vm357_vm3, %v356_v7, 0.0 }
 0x2f5   :  { %359 = vst [vmem:[#allocation10] sm:$0xff] %v358_v8 }
 0x2f6   :  { %661 = shalt.err (!%p658_p8)
}
 0x2f7   :  { %s662_s8 = scalar_lea.hbm %s835_s7, 128 }
 0x2f8   :  { %p663_p9 = scmp.ne.s32.totalorder %s835_s7, %s662_s8  ;;  %p666_p10 = scmp.lt.u32.totalorder %s662_s8, %s835_s7 }
 0x2fa   :  { %p668_p11 = pnand %p666_p10, %p663_p9 }
 0x2fc   :  { %671 = shalt.err (!%p668_p11)
}
 0x2fd   :  { %369 = dma.vmem_to_hbm [thread:$0]  %s367_s29, 128, %s835_s7, [#allocation4]  }
 0x2fe   :  { %678 = dma.done.wait [#allocation4], 128  }
 0x2ff   :  { %679 = vsyncadd [#allocation4], 4294967168 }
 0x300   :  { %373 = vsyncpa [#allocation3], 1 }
 0x301   :  { %374 = vsyncpa [#allocation6], 1 }
 0x302   :  { %375 = vsyncpa [#allocation9], 1 }
 0x303   :  { %376 = vsyncpa [#allocation4], 1 }

</bundles_post_ra>
